<compile_context>
chip_gen: v6e
topology: v6e:2x2x1
jax: 0.10.0
libtpu: 0.0.40
codegen_flags: <defaults>
</compile_context>

<pallas_src>
import jax
import jax.numpy as jnp
from jax import lax
from jax.experimental import pallas as pl
from jax.experimental.pallas import tpu as pltpu

# --- constants from ScalableLossConfig / module __init__ (no learned params) ---
TRANSACTION_COST_BPS = 1.0     # config.transaction_cost_bps
MARKET_IMPACT_FACTOR = 0.1     # config.market_impact_factor
MARKET_IMPACT_COEFF = 0.5      # self.market_impact_coeff
LIQUIDITY_PENALTY = 0.1        # self.liquidity_penalty
BASE_SPREAD_BPS = 2.0          # self.base_spread_bps (unused in forward)

_N_OUT = 5  # total, base, market_impact, liquidity, turnover


def _make_kernel(batch_size: int, num_assets: int, tile_b: int,
                 n_chunks: int, use_vol: bool, has_mc: bool):
    """Build the per-batch-chunk partial-sum kernel."""
    rows_ragged = (batch_size % tile_b) != 0    # last chunk has invalid rows
    cols_ragged = (num_assets % 128) != 0       # VMEM pad lanes exist
    blk = (tile_b, num_assets)

    def kernel(*refs):
        it = iter(refs)
        cur_ref = next(it)
        tgt_ref = next(it)
        vol_ref = next(it) if use_vol else None
        mc_ref = next(it) if has_mc else None
        out_ref = next(it)                      # (1, 8, 128) per-chunk partials

        chunk = pl.program_id(0)

        def body(apply_row_mask: bool):
            cur = cur_ref[...].astype(jnp.float32)
            tgt = tgt_ref[...].astype(jnp.float32)
            pc = jnp.abs(tgt - cur)              # position_changes

            mask = None
            if cols_ragged:
                col = lax.broadcasted_iota(jnp.int32, blk, 1)
                mask = col < num_assets
            if apply_row_mask:
                row = chunk * tile_b + lax.broadcasted_iota(jnp.int32, blk, 0)
                rmask = row < batch_size
                mask = rmask if mask is None else (mask & rmask)

            if mask is not None:
                pc = jnp.where(mask, pc, 0.0)

            if use_vol:
                vol = vol_ref[...].astype(jnp.float32)
                if mask is not None:
                    vol = jnp.where(mask, vol, 1.0)   # keep divisor finite
                rel = pc / (vol + 1e-8)               # relative_trade_size
                mi_raw = rel * jnp.sqrt(rel)          # rel ** 1.5 (unscaled)
                mi_scale = MARKET_IMPACT_COEFF
            else:
                mi_raw = pc * jnp.sqrt(pc)            # pc ** 1.5 (unscaled)
                mi_scale = MARKET_IMPACT_FACTOR

            # tree-reduce the whole block; constant scalings hoisted to sums
            pc_sum = jnp.sum(pc)
            mi_sum = mi_scale * jnp.sum(mi_raw)
            if has_mc:
                mc = mc_ref[...].astype(jnp.float32)
                if mask is not None:
                    mc = jnp.where(mask, mc, 1.0)
                liq_sum = LIQUIDITY_PENALTY * jnp.sum(pc / (mc + 1e-8))
            else:
                liq_sum = jnp.float32(0.0)

            base_sum = pc_sum * (TRANSACTION_COST_BPS / 10000.0)
            total_sum = base_sum + mi_sum + liq_sum

            # pack the 5 partial sums into a lane-dense (1, 8, 128) block
            lane = lax.broadcasted_iota(jnp.int32, (1, 8, 128), 2)
            vec = jnp.where(lane == 0, total_sum,
                  jnp.where(lane == 1, base_sum,
                  jnp.where(lane == 2, mi_sum,
                  jnp.where(lane == 3, liq_sum,
                  jnp.where(lane == 4, pc_sum, 0.0)))))
            out_ref[...] = vec.astype(jnp.float32)

        if rows_ragged:
            is_last = chunk == n_chunks - 1

            @pl.when(is_last)
            def _():
                body(True)        # row mask only on the ragged last chunk

            @pl.when(jnp.logical_not(is_last))
            def _():
                body(False)       # steady state: no row mask
        else:
            body(False)

    return kernel


def _physical_vmem_bytes(default_bytes: int = 64 * 1024 * 1024) -> int:
    """Per-core VMEM capacity; conservative 64 MiB fallback (legal everywhere)."""
    try:
        info = pltpu.get_tpu_info()
        return int(getattr(info, "vmem_capacity_bytes", default_bytes))
    except Exception:
        return default_bytes


def transaction_cost_model(current_positions,
                           target_positions,
                           volumes=None,
                           market_cap=None,
                           vmem_budget_bytes=None):
    """Pallas implementation of RealisticTransactionCostModel.forward."""
    B, N = current_positions.shape

    has_mc = market_cap is not None
    # torch code only uses volumes when market_cap is also given
    use_vol = (volumes is not None) and has_mc

    inputs = [current_positions, target_positions]
    if use_vol:
        inputs.append(volumes)
    if has_mc:
        inputs.append(market_cap)

    phys_vmem = _physical_vmem_bytes()
    if vmem_budget_bytes is None:
        # ~half of physical VMEM: ≈64 MiB on v5e/v6e (128 MiB), ≈32 MiB on v7x (64 MiB)
        vmem_budget_bytes = phys_vmem // 2

    # double-buffered input bytes per batch row, from the ACTUAL input dtypes
    # (bf16 inputs halve HBM traffic and get 2x bigger tiles automatically)
    bytes_per_row = 2 * sum(x.dtype.itemsize for x in inputs) * N
    tile_b = int(vmem_budget_bytes // bytes_per_row)
    if tile_b >= B:
        tile_b = B                               # full batch in one block
    else:
        tile_b = max(8, (tile_b // 8) * 8)       # sublane-aligned chunk
    # TODO(synk): for extreme num_assets (8 rows exceed the VMEM budget) add an
    # inner asset-split grid axis; not needed at the production shape (N=10000).
    n_chunks = pl.cdiv(B, tile_b)

    need_bytes = bytes_per_row * tile_b + 2 * 8 * 128 * 4
    vmem_limit = int(min(max(phys_vmem - (8 << 20), 16 << 20),
                         max(16 << 20, need_bytes + (4 << 20))))

    blk_spec = pl.BlockSpec((tile_b, N), lambda i: (i, 0))

    out = pl.pallas_call(
        _make_kernel(B, N, tile_b, n_chunks, use_vol, has_mc),
        out_shape=jax.ShapeDtypeStruct((n_chunks, 8, 128), jnp.float32),
        grid_spec=pltpu.PrefetchScalarGridSpec(
            num_scalar_prefetch=0,
            grid=(n_chunks,),
            in_specs=[blk_spec] * len(inputs),
            out_specs=pl.BlockSpec((1, 8, 128), lambda i: (i, 0, 0)),
        ),
        compiler_params=pltpu.CompilerParams(
            dimension_semantics=("parallel",),   # independent batch chunks (megacore on v7x)
            vmem_limit_bytes=vmem_limit,
        ),
    )(*inputs)

    # tiny cross-chunk reduction in plain JAX; mean over batch of per-row sums
    partial = out[:, 0, :_N_OUT]                 # (n_chunks, 5)
    sums = jnp.sum(partial, axis=0) * (1.0 / float(B))
    return {
        "transaction_cost_penalty": sums[0],
        "base_costs": sums[1],
        "market_impact_costs": sums[2],
        "liquidity_costs": sums[3],
        "total_turnover": sums[4],
    }


def _reference(cur, tgt, vol=None, mc=None):
    """Pure-JAX reference mirroring the PyTorch forward exactly."""
    cur = cur.astype(jnp.float32)
    tgt = tgt.astype(jnp.float32)
    pc = jnp.abs(tgt - cur)
    base = pc * (TRANSACTION_COST_BPS / 10000.0)
    if vol is not None and mc is not None:
        rel = pc / (vol.astype(jnp.float32) + 1e-8)
        mi = MARKET_IMPACT_COEFF * rel ** 1.5
    else:
        mi = MARKET_IMPACT_FACTOR * pc ** 1.5
    if mc is not None:
        liq = LIQUIDITY_PENALTY * pc / (mc.astype(jnp.float32) + 1e-8)
    else:
        liq = jnp.zeros_like(pc)
    total = base + mi + liq
    return {
        "transaction_cost_penalty": jnp.mean(jnp.sum(total, axis=1)),
        "base_costs": jnp.mean(jnp.sum(base, axis=1)),
        "market_impact_costs": jnp.mean(jnp.sum(mi, axis=1)),
        "liquidity_costs": jnp.mean(jnp.sum(liq, axis=1)),
        "total_turnover": jnp.mean(jnp.sum(pc, axis=1)),
    }


if __name__ == "__main__":
    key = jax.random.PRNGKey(0)
    k1, k2, k3, k4 = jax.random.split(key, 4)

    # Small demo shapes (config default is batch=1000, num_assets=10000).
    # N deliberately NOT a multiple of 128 to exercise pad-lane masking.
    batch_size, num_assets = 2, 500
    cur = 0.02 * jax.random.normal(k1, (batch_size, num_assets), jnp.float32)
    tgt = 0.02 * jax.random.normal(k2, (batch_size, num_assets), jnp.float32)
    vol = jax.random.uniform(k3, (batch_size, num_assets), jnp.float32,
                             minval=0.5, maxval=1.5)
    mc = jax.random.uniform(k4, (batch_size, num_assets), jnp.float32,
                            minval=1.0, maxval=10.0)

    def check(out, ref, tag):
        for name in ref:
            o, r = out[name], ref[name]
            assert jnp.allclose(o, r, rtol=5e-4, atol=1e-6), (
                f"mismatch ({tag}) in {name}: {o} vs {r}")

    # case 1: volumes + market_cap given (relative-trade-size impact branch)
    out1 = jax.block_until_ready(transaction_cost_model(cur, tgt, vol, mc))
    check(out1, _reference(cur, tgt, vol, mc), "case1")

    # case 2: no optional inputs (pc**1.5 impact, zero liquidity costs)
    out2 = jax.block_until_ready(transaction_cost_model(cur, tgt))
    check(out2, _reference(cur, tgt), "case2")

    # case 3: force a multi-chunk grid with ragged batch rows AND ragged lanes
    B3, N3 = 12, 200
    c1, c2, c3, c4 = jax.random.split(jax.random.PRNGKey(1), 4)
    cur3 = 0.02 * jax.random.normal(c1, (B3, N3), jnp.float32)
    tgt3 = 0.02 * jax.random.normal(c2, (B3, N3), jnp.float32)
    vol3 = jax.random.uniform(c3, (B3, N3), jnp.float32, minval=0.5, maxval=1.5)
    mc3 = jax.random.uniform(c4, (B3, N3), jnp.float32, minval=1.0, maxval=10.0)
    out3 = jax.block_until_ready(
        transaction_cost_model(cur3, tgt3, vol3, mc3, vmem_budget_bytes=60_000))
    check(out3, _reference(cur3, tgt3, vol3, mc3), "case3")

    print("KERNEL_OK")
</pallas_src>

<mosaic_0001>
module attributes {stable_mosaic.version = 11 : i64} {
  func.func @kernel(%arg0: i32, %arg1: memref<2x500xf32, #tpu.memory_space<vmem>>, %arg2: memref<2x500xf32, #tpu.memory_space<vmem>>, %arg3: memref<2x500xf32, #tpu.memory_space<vmem>>, %arg4: memref<2x500xf32, #tpu.memory_space<vmem>>, %arg5: memref<1x8x128xf32, #tpu.memory_space<vmem>>) attributes {dimension_semantics = [#tpu.dimension_semantics<parallel>], iteration_bounds = array<i64: 1>, scalar_prefetch = 0 : i64, scratch_operands = 0 : i64, tpu.core_type = #tpu.core_type<tc>, window_params = [{transform_indices = @transform_0, window_bounds = array<i64: 2, 500>}, {transform_indices = @transform_1, window_bounds = array<i64: 2, 500>}, {transform_indices = @transform_2, window_bounds = array<i64: 2, 500>}, {transform_indices = @transform_3, window_bounds = array<i64: 2, 500>}, {transform_indices = @transform_4, window_bounds = array<i64: 1, 8, 128>}]} {
    %c0 = arith.constant 0 : index
    %c0_0 = arith.constant 0 : index
    %0 = vector.load %arg1[%c0, %c0_0] : memref<2x500xf32, #tpu.memory_space<vmem>>, vector<2x500xf32>
    %c0_1 = arith.constant 0 : index
    %c0_2 = arith.constant 0 : index
    %1 = vector.load %arg2[%c0_1, %c0_2] : memref<2x500xf32, #tpu.memory_space<vmem>>, vector<2x500xf32>
    %2 = arith.subf %1, %0 : vector<2x500xf32>
    %3 = math.absf %2 : vector<2x500xf32>
    %4 = tpu.iota {dimensions = array<i32: 1>} : vector<2x500xi32>
    %c500_i32 = arith.constant 500 : i32
    %5 = vector.broadcast %c500_i32 : i32 to vector<2x500xi32>
    %6 = arith.cmpi slt, %4, %5 : vector<2x500xi32>
    %cst = arith.constant 0.000000e+00 : f32
    %7 = vector.broadcast %cst : f32 to vector<2x500xf32>
    %8 = arith.select %6, %3, %7 : vector<2x500xi1>, vector<2x500xf32>
    %c0_3 = arith.constant 0 : index
    %c0_4 = arith.constant 0 : index
    %9 = vector.load %arg3[%c0_3, %c0_4] : memref<2x500xf32, #tpu.memory_space<vmem>>, vector<2x500xf32>
    %cst_5 = arith.constant 1.000000e+00 : f32
    %10 = vector.broadcast %cst_5 : f32 to vector<2x500xf32>
    %11 = arith.select %6, %9, %10 : vector<2x500xi1>, vector<2x500xf32>
    %cst_6 = arith.constant 9.99999993E-9 : f32
    %12 = vector.broadcast %cst_6 : f32 to vector<2x500xf32>
    %13 = arith.addf %11, %12 : vector<2x500xf32>
    %14 = arith.divf %8, %13 : vector<2x500xf32>
    %15 = math.sqrt %14 : vector<2x500xf32>
    %16 = arith.mulf %14, %15 : vector<2x500xf32>
    %17 = vector.shape_cast %8 : vector<2x500xf32> to vector<1x2x500xf32>
    %cst_7 = arith.constant dense<0.000000e+00> : vector<1xf32>
    %18 = vector.multi_reduction <add>, %17, %cst_7 [1, 2] : vector<1x2x500xf32> to vector<1xf32>
    %19 = vector.shape_cast %18 : vector<1xf32> to vector<1x1x1xf32>
    %20 = vector.extract %19[0, 0, 0] : f32 from vector<1x1x1xf32>
    %21 = vector.shape_cast %16 : vector<2x500xf32> to vector<1x2x500xf32>
    %cst_8 = arith.constant dense<0.000000e+00> : vector<1xf32>
    %22 = vector.multi_reduction <add>, %21, %cst_8 [1, 2] : vector<1x2x500xf32> to vector<1xf32>
    %23 = vector.shape_cast %22 : vector<1xf32> to vector<1x1x1xf32>
    %24 = vector.extract %23[0, 0, 0] : f32 from vector<1x1x1xf32>
    %cst_9 = arith.constant 5.000000e-01 : f32
    %25 = arith.mulf %cst_9, %24 : f32
    %c0_10 = arith.constant 0 : index
    %c0_11 = arith.constant 0 : index
    %26 = vector.load %arg4[%c0_10, %c0_11] : memref<2x500xf32, #tpu.memory_space<vmem>>, vector<2x500xf32>
    %cst_12 = arith.constant 1.000000e+00 : f32
    %27 = vector.broadcast %cst_12 : f32 to vector<2x500xf32>
    %28 = arith.select %6, %26, %27 : vector<2x500xi1>, vector<2x500xf32>
    %cst_13 = arith.constant 9.99999993E-9 : f32
    %29 = vector.broadcast %cst_13 : f32 to vector<2x500xf32>
    %30 = arith.addf %28, %29 : vector<2x500xf32>
    %31 = arith.divf %8, %30 : vector<2x500xf32>
    %32 = vector.shape_cast %31 : vector<2x500xf32> to vector<1x2x500xf32>
    %cst_14 = arith.constant dense<0.000000e+00> : vector<1xf32>
    %33 = vector.multi_reduction <add>, %32, %cst_14 [1, 2] : vector<1x2x500xf32> to vector<1xf32>
    %34 = vector.shape_cast %33 : vector<1xf32> to vector<1x1x1xf32>
    %35 = vector.extract %34[0, 0, 0] : f32 from vector<1x1x1xf32>
    %cst_15 = arith.constant 1.000000e-01 : f32
    %36 = arith.mulf %cst_15, %35 : f32
    %cst_16 = arith.constant 9.99999974E-5 : f32
    %37 = arith.mulf %20, %cst_16 : f32
    %38 = arith.addf %37, %25 : f32
    %39 = arith.addf %38, %36 : f32
    %40 = tpu.iota {dimensions = array<i32: 2>} : vector<1x8x128xi32>
    %c0_i32 = arith.constant 0 : i32
    %41 = vector.broadcast %c0_i32 : i32 to vector<1x8x128xi32>
    %42 = arith.cmpi eq, %40, %41 : vector<1x8x128xi32>
    %c1_i32 = arith.constant 1 : i32
    %43 = vector.broadcast %c1_i32 : i32 to vector<1x8x128xi32>
    %44 = arith.cmpi eq, %40, %43 : vector<1x8x128xi32>
    %c2_i32 = arith.constant 2 : i32
    %45 = vector.broadcast %c2_i32 : i32 to vector<1x8x128xi32>
    %46 = arith.cmpi eq, %40, %45 : vector<1x8x128xi32>
    %c3_i32 = arith.constant 3 : i32
    %47 = vector.broadcast %c3_i32 : i32 to vector<1x8x128xi32>
    %48 = arith.cmpi eq, %40, %47 : vector<1x8x128xi32>
    %c4_i32 = arith.constant 4 : i32
    %49 = vector.broadcast %c4_i32 : i32 to vector<1x8x128xi32>
    %50 = arith.cmpi eq, %40, %49 : vector<1x8x128xi32>
    %cst_17 = arith.constant 0.000000e+00 : f32
    %51 = vector.broadcast %20 : f32 to vector<1x8x128xf32>
    %52 = vector.broadcast %cst_17 : f32 to vector<1x8x128xf32>
    %53 = arith.select %50, %51, %52 : vector<1x8x128xi1>, vector<1x8x128xf32>
    %54 = vector.broadcast %36 : f32 to vector<1x8x128xf32>
    %55 = arith.select %48, %54, %53 : vector<1x8x128xi1>, vector<1x8x128xf32>
    %56 = vector.broadcast %25 : f32 to vector<1x8x128xf32>
    %57 = arith.select %46, %56, %55 : vector<1x8x128xi1>, vector<1x8x128xf32>
    %58 = vector.broadcast %37 : f32 to vector<1x8x128xf32>
    %59 = arith.select %44, %58, %57 : vector<1x8x128xi1>, vector<1x8x128xf32>
    %60 = vector.broadcast %39 : f32 to vector<1x8x128xf32>
    %61 = arith.select %42, %60, %59 : vector<1x8x128xi1>, vector<1x8x128xf32>
    %c0_18 = arith.constant 0 : index
    %c0_19 = arith.constant 0 : index
    %c0_20 = arith.constant 0 : index
    %62 = vector.load %arg5[%c0_18, %c0_19, %c0_20] : memref<1x8x128xf32, #tpu.memory_space<vmem>>, vector<1x8x128xf32>
    tpu.vector_store %arg5[%c0_18, %c0_19, %c0_20], %61 {strides = array<i32>} : memref<1x8x128xf32, #tpu.memory_space<vmem>>, vector<1x8x128xf32>,
    return
  }
  func.func @transform_0(%arg0: i32) -> (i32, i32) {
    %c0_i32 = arith.constant 0 : i32
    %c0_i32_0 = arith.constant 0 : i32
    return %arg0, %c0_i32 : i32, i32
  }
  func.func @transform_1(%arg0: i32) -> (i32, i32) {
    %c0_i32 = arith.constant 0 : i32
    %c0_i32_0 = arith.constant 0 : i32
    return %arg0, %c0_i32 : i32, i32
  }
  func.func @transform_2(%arg0: i32) -> (i32, i32) {
    %c0_i32 = arith.constant 0 : i32
    %c0_i32_0 = arith.constant 0 : i32
    return %arg0, %c0_i32 : i32, i32
  }
  func.func @transform_3(%arg0: i32) -> (i32, i32) {
    %c0_i32 = arith.constant 0 : i32
    %c0_i32_0 = arith.constant 0 : i32
    return %arg0, %c0_i32 : i32, i32
  }
  func.func @transform_4(%arg0: i32) -> (i32, i32, i32) {
    %c0_i32 = arith.constant 0 : i32
    %c0_i32_0 = arith.constant 0 : i32
    %c0_i32_1 = arith.constant 0 : i32
    return %arg0, %c0_i32, %c0_i32_0 : i32, i32, i32
  }
}

</mosaic_0001>

<bundles_post_ra>
// kernel: tpu_custom_call.1
= control target key start
LH: loop header
LB: loop body
LE: loop exit
PB: predicated region body
PF: predicated region fallthrough
CT: control target
= control target key end

     0   :  { %9 = vsyncpa [#allocation3], 0  ;;  %s517_s0 = inlined_call_operand.hbm [shape: f32[2,500], index: 0, kind: input, shape index: {}]   ;;  %s518_s1 = inlined_call_operand.hbm [shape: f32[2,500], index: 1, kind: input, shape index: {}]   ;;  %s519_s2 = inlined_call_operand.hbm [shape: f32[2,500], index: 2, kind: input, shape index: {}]   ;;  %s520_s3 = inlined_call_operand.hbm [shape: f32[2,500], index: 3, kind: input, shape index: {}]   ;;  %s521_s4 = inlined_call_operand.hbm [shape: f32[1,8,128], index: 4, kind: output, shape index: {}]  }
   0x1   :  { %10 = vsyncpa [#allocation6], 0 }
   0x2   :  { %11 = vsyncpa [#allocation9], 0 }
   0x3   :  { %12 = vsyncpa [#allocation4], 0  ;;  %s448_s15 = smov [#allocation5]   ;;  %s449_s17 = smov [#allocation2]  }
   0x4   :  { %s29_s16 = sshll.u32 %s448_s15, 4  ;;  %s19_s18 = sshll.u32 %s449_s17, 4  ;;  %s30_s16 = int_to_ptr.vmem [resolvable:$true] %s29_s16  ;;  %s20_s18 = int_to_ptr.vmem [resolvable:$true] %s19_s18 }
   0x5   :  { %s348_s19 = scalar_lea.vmem %s30_s16, 128  ;;  %p353_p1 = scmp.lt.s32.totalorder %s30_s16, %s30_s16 }
   0x6   :  { %p349_p0 = scmp.ne.s32.totalorder %s30_s16, %s348_s19  ;;  %p354_p2 = scmp.lt.s32.totalorder %s348_s19, %s348_s19 }
   0x8   :  { %p355_p3 = por %p354_p2, %p353_p1 }
   0xa   :  { %p356_p4 = pnand %p355_p3, %p349_p0 }
   0xc   :  { %359 = shalt.err (!%p356_p4)
}
   0xd   :  { %32 = dma.hbm_to_vmem [thread:$0]  %s518_s1, 128, %s30_s16, [#allocation6]  }
   0xe   :  { %s368_s22 = scalar_lea.vmem %s20_s18, 128  ;;  %p373_p6 = scmp.lt.s32.totalorder %s20_s18, %s20_s18 }
   0xf   :  { %p369_p5 = scmp.ne.s32.totalorder %s20_s18, %s368_s22  ;;  %p374_p7 = scmp.lt.s32.totalorder %s368_s22, %s368_s22 }
  0x11   :  { %p375_p8 = por %p374_p7, %p373_p6 }
  0x13   :  { %p376_p9 = pnand %p375_p8, %p369_p5 }
  0x15   :  { %379 = shalt.err (!%p376_p9)
}
  0x16   :  { %22 = dma.hbm_to_vmem [thread:$0]  %s517_s0, 128, %s20_s18, [#allocation3]  }
  0x17   :  { %s450_s25 = smov [#allocation7]   ;;  %s451_s27 = smov [#allocation8]  }
  0x18   :  { %s39_s26 = sshll.u32 %s450_s25, 4  ;;  %s49_s28 = sshll.u32 %s451_s27, 4  ;;  %s40_s26 = int_to_ptr.vmem [resolvable:$true] %s39_s26  ;;  %s50_s28 = int_to_ptr.vmem [resolvable:$true] %s49_s28 }
  0x19   :  { %s388_s29 = scalar_lea.vmem %s40_s26, 128  ;;  %p393_p11 = scmp.lt.s32.totalorder %s40_s26, %s40_s26 }
  0x1a   :  { %p389_p10 = scmp.ne.s32.totalorder %s40_s26, %s388_s29  ;;  %p394_p12 = scmp.lt.s32.totalorder %s388_s29, %s388_s29 }
  0x1c   :  { %p395_p13 = por %p394_p12, %p393_p11 }
  0x1e   :  { %p396_p0 = pnand %p395_p13, %p389_p10 }
  0x20   :  { %399 = shalt.err (!%p396_p0)
}
  0x21   :  { %42 = dma.hbm_to_vmem [thread:$0]  %s519_s2, 128, %s40_s26, [#allocation6]  }
  0x22   :  { %s408_s5 = scalar_lea.vmem %s50_s28, 128  ;;  %p413_p2 = scmp.lt.s32.totalorder %s50_s28, %s50_s28 }
  0x23   :  { %p409_p1 = scmp.ne.s32.totalorder %s50_s28, %s408_s5  ;;  %p414_p3 = scmp.lt.s32.totalorder %s408_s5, %s408_s5 }
  0x25   :  { %p415_p4 = por %p414_p3, %p413_p2 }
  0x27   :  { %p416_p5 = pnand %p415_p4, %p409_p1 }
  0x29   :  { %419 = shalt.err (!%p416_p5)
}
  0x2a   :  { %52 = dma.hbm_to_vmem [thread:$0]  %s520_s3, 128, %s50_s28, [#allocation9]  }
  0x2b   :  { %440 = dma.done.wait [#allocation3], 128  }
  0x2c   :  { %441 = vsyncadd [#allocation3], 4294967168 }
  0x2d   :  { %442 = dma.done.wait [#allocation6], 256  }
  0x2e   :  { %443 = vsyncadd [#allocation6], 4294967040 }
  0x2f   :  { %444 = dma.done.wait [#allocation9], 128  }
  0x30   :  { %445 = vsyncadd [#allocation9], 4294967168  ;;  %v69_v0 = vlaneseq  ;;  %v452_v1 = vmov 1983009808   ;;  %v65_v7 = vld [vmem:[#allocation2] sm:$0xff]  ;;  %v66_v8 = vld [vmem:[#allocation5] sm:$0xff] }
  0x31   :  { %v81_v2 = vunpack.c.l.s4 %v452_v1  ;;  %v104_v10 = vld [vmem:[#allocation7] sm:$0xff]  ;;  %v67_v11 = vsub.f32 %v66_v8, %v65_v7  ;;  %v210_v14 = vld [vmem:[#allocation8] sm:$0xff]  ;;  %vm175_vm0 = vcmask 1041408   ;;  %vm181_vm1 = vcmask 943104   ;;  %s453_s12 = smov [#allocation10]  }
  0x32   :  { %v84_v3 = vshrl.u32 %v69_v0, 7  ;;  %v491_v4 = vand.u32 127, %v69_v0  ;;  %v106_v12 = vcombine.high %v104_v10, %v104_v10  ;;  %v212_v15 = vcombine.high %v210_v14, %v210_v14  ;;  %s291_s13 = sshll.u32 %s453_s12, 4  ;;  %s292_s13 = int_to_ptr.vmem [resolvable:$true] %s291_s13 }
  0x33   :  { %v82_v5 = vunpack.c.0.s8 %v81_v2  ;;  %v68_v17 = vand.u32 2147483647, %v67_v11  ;;  %s420_s15 = scalar_lea.vmem %s292_s13, 128  ;;  %p425_p7 = scmp.lt.s32.totalorder %s292_s13, %s292_s13 }
  0x34   :  { %v73_v9 = vadd.s32 384, %v491_v4  ;;  %vm273_vm11 = vcmp.eq.s32.totalorder %v491_v4, 4  ;;  %vm272_vm12 = vcmp.eq.s32.totalorder %v491_v4, 3  ;;  %vm271_vm13 = vcmp.eq.s32.totalorder %v491_v4, 2  ;;  %p421_p6 = scmp.ne.s32.totalorder %s292_s13, %s420_s15  ;;  %p426_p8 = scmp.lt.s32.totalorder %s420_s15, %s420_s15 }
  0x35   :  { %v85_v6 = vsub.s32 %v82_v5, %v84_v3  ;;  %v79_v24 = vcombine.high %v68_v17, %v68_v17  ;;  %vm270_vm14 = vcmp.eq.s32.totalorder %v491_v4, 1  ;;  %vm269_vm15 = vcmp.eq.s32.totalorder %v491_v4, 0 }
  0x36   :  { %vm77_vm2 = vcmp.lt.s32.totalorder %v73_v9, 500  ;;  %p427_p9 = por %p426_p8, %p425_p7 }
  0x37   :  { %v113_v13 = vrot.slane %v104_v10, %v85_v6  ;;  %v219_v16 = vrot.slane %v210_v14, %v85_v6  ;;  %v120_v18 = vrot.slane %v106_v12, %v85_v6  ;;  %v226_v21 = vrot.slane %v212_v15, %v85_v6 }
  0x38   :  { %v86_v25 = vrot.slane %v68_v17, %v85_v6  ;;  %v93_v31 = vrot.slane %v79_v24, %v85_v6  ;;  %p428_p10 = pnand %p427_p9, %p421_p6 }
  0x39   :  { %v121_v19 = vcombine.high %v113_v13, %v113_v13  ;;  %v131_v20 = vadd.f32 1e-08, %v113_v13  ;;  %v227_v22 = vcombine.high %v219_v16, %v219_v16  ;;  %v237_v23 = vadd.f32 1e-08, %v219_v16 }
  0x3a   :  { %v122_v26 = vcombine.high %v120_v18, %v120_v18  ;;  %v133_v28 = vadd.f32 1e-08, %v120_v18  ;;  %v228_v29 = vcombine.high %v226_v21, %v226_v21  ;;  %v94_v32 = vcombine.high %v86_v25, %v86_v25 }
  0x3b   :  { %v132_v27 = vadd.f32 1e-08, %v121_v19  ;;  %316 = vrcp.f32 %v131_v20  ;;  %v238_v30 = vadd.f32 1e-08, %v227_v22  ;;  %v176_v35 = vsel %vm175_vm0, %v86_v25, 0.0 }
  0x3c   :  { %v130_v33 = vsel %vm77_vm2, %v122_v26, 1.0  ;;  %v236_v36 = vsel %vm77_vm2, %v228_v29, 1.0  ;;  %v95_v37 = vcombine.high %v93_v31, %v93_v31  ;;  %v177_v38 = vsel %vm175_vm0, %v94_v32, 0.0 }
  0x3d   :  { %318 = vrcp.f32 %v132_v27  ;;  %v134_v34 = vadd.f32 1e-08, %v130_v33  ;;  %v179_v39 = vsel %vm175_vm0, %v93_v31, 0.0  ;;  %v239_v40 = vadd.f32 1e-08, %v226_v21 }
  0x3e   :  { %320 = vrcp.f32 %v133_v28  ;;  %v178_v41 = vadd.f32 %v177_v38, %v176_v35  ;;  %v240_v42 = vadd.f32 1e-08, %v236_v36  ;;  %v103_v43 = vsel %vm77_vm2, %v95_v37, 0.0 }
  0x3f   :  { %322 = vrcp.f32 %v134_v34  ;;  %v182_v45 = vsel %vm181_vm1, %v103_v43, 0.0 }
  0x40   :  { %324 = vrcp.f32 %v237_v23  ;;  %v180_v44 = vadd.f32 %v179_v39, %v178_v41 }
  0x41   :  { %326 = vrcp.f32 %v238_v30 }
  0x42   :  { %328 = vrcp.f32 %v239_v40  ;;  %v183_v46 = vadd.f32 %v182_v45, %v180_v44 }
  0x43   :  { %330 = vrcp.f32 %v240_v42 }
  0x44   :  { %184 = vadd.xlane.f32.xlu0 %v183_v46 }
  0x48   :  { %v317_v47 = vpop.eup %316 }
  0x49   :  { %v136_v49 = vmul.f32 %v317_v47, %v86_v25 }
  0x4a   :  { %v319_v48 = vpop.eup %318 }
  0x4b   :  { %v321_v50 = vpop.eup %320  ;;  %v138_v51 = vmul.f32 %v319_v48, %v94_v32  ;;  %332 = vrsqrt.f32 %v136_v49  ;;  %vm145_vm3 = vcmp.eq.f32.partialorder %v136_v49, inf  ;;  %v148_v8 = vand.u32 2147483648, %v136_v49 }
  0x4c   :  { %v140_v52 = vmul.f32 %v321_v50, %v93_v31  ;;  %v323_v53 = vpop.eup %322  ;;  %vm147_vm4 = vcmp.eq.f32.partialorder %v136_v49, 0.0 }
  0x4d   :  { %334 = vrsqrt.f32 %v138_v51  ;;  %v325_v54 = vpop.eup %324  ;;  %v142_v55 = vmul.f32 %v323_v53, %v103_v43  ;;  %vm152_vm5 = vcmp.eq.f32.partialorder %v138_v51, inf  ;;  %v155_v11 = vand.u32 2147483648, %v138_v51 }
  0x4e   :  { %336 = vrsqrt.f32 %v140_v52  ;;  %v327_v56 = vpop.eup %326  ;;  %v242_v57 = vmul.f32 %v325_v54, %v86_v25  ;;  %vm154_vm6 = vcmp.eq.f32.partialorder %v138_v51, 0.0  ;;  %vm159_vm7 = vcmp.eq.f32.partialorder %v140_v52, inf }
  0x4f   :  { %v329_v58 = vpop.eup %328  ;;  %v244_v59 = vmul.f32 %v327_v56, %v94_v32  ;;  %338 = vrsqrt.f32 %v142_v55  ;;  %v162_v14 = vand.u32 2147483648, %v140_v52  ;;  %vm161_vm8 = vcmp.eq.f32.partialorder %v140_v52, 0.0 }
  0x50   :  { %v331_v60 = vpop.eup %330  ;;  %v246_v61 = vmul.f32 %v329_v58, %v93_v31  ;;  %v249_v62 = vsel %vm175_vm0, %v242_v57, 0.0  ;;  %vm166_vm9 = vcmp.eq.f32.partialorder %v142_v55, inf  ;;  %vm168_vm10 = vcmp.eq.f32.partialorder %v142_v55, 0.0 }
  0x51   :  { %v248_v63 = vmul.f32 %v331_v60, %v103_v43  ;;  %v250_v0 = vsel %vm175_vm0, %v244_v59, 0.0  ;;  %v169_v20 = vand.u32 2147483648, %v142_v55 }
  0x52   :  { %v251_v1 = vadd.f32 %v250_v0, %v249_v62  ;;  %v252_v2 = vsel %vm175_vm0, %v246_v61, 0.0 }
  0x53   :  { %v254_v3 = vsel %vm181_vm1, %v248_v63, 0.0 }
  0x54   :  { %v253_v5 = vadd.f32 %v252_v2, %v251_v1 }
  0x56   :  { %v255_v6 = vadd.f32 %v254_v3, %v253_v5 }
  0x58   :  { %v333_v7 = vpop.eup %332  ;;  %256 = vadd.xlane.f32.xlu1 %v255_v6 }
  0x59   :  { %v144_v10 = vmul.f32 %v333_v7, %v136_v49 }
  0x5a   :  { %v335_v9 = vpop.eup %334 }
  0x5b   :  { %v337_v12 = vpop.eup %336  ;;  %v151_v13 = vmul.f32 %v335_v9, %v138_v51  ;;  %v146_v15 = vsel %vm145_vm3, %v136_v49, %v144_v10 }
  0x5c   :  { %v158_v16 = vmul.f32 %v337_v12, %v140_v52  ;;  %v339_v17 = vpop.eup %338  ;;  %v149_v18 = vsel %vm147_vm4, %v148_v8, %v146_v15 }
  0x5d   :  { %v153_v19 = vsel %vm152_vm5, %v138_v51, %v151_v13  ;;  %v165_v23 = vmul.f32 %v339_v17, %v142_v55  ;;  %v171_v24 = vmul.f32 %v149_v18, %v136_v49 }
  0x5e   :  { %v156_v21 = vsel %vm154_vm6, %v155_v11, %v153_v19  ;;  %v160_v22 = vsel %vm159_vm7, %v140_v52, %v158_v16 }
  0x5f   :  { %v163_v25 = vsel %vm161_vm8, %v162_v14, %v160_v22  ;;  %v172_v26 = vmul.f32 %v156_v21, %v138_v51  ;;  %v167_v27 = vsel %vm166_vm9, %v142_v55, %v165_v23  ;;  %v193_v29 = vsel %vm175_vm0, %v171_v24, 0.0 }
  0x60   :  { %v173_v28 = vmul.f32 %v163_v25, %v140_v52  ;;  %v170_v30 = vsel %vm168_vm10, %v169_v20, %v167_v27 }
  0x61   :  { %v194_v31 = vsel %vm175_vm0, %v172_v26, 0.0  ;;  %v174_v32 = vmul.f32 %v170_v30, %v142_v55 }
  0x62   :  { %v195_v33 = vadd.f32 %v194_v31, %v193_v29  ;;  %v196_v34 = vsel %vm175_vm0, %v173_v28, 0.0 }
  0x63   :  { %v198_v36 = vsel %vm181_vm1, %v174_v32, 0.0 }
  0x64   :  { %v197_v35 = vadd.f32 %v196_v34, %v195_v33 }
  0x66   :  { %v199_v37 = vadd.f32 %v198_v36, %v197_v35 }
  0x68   :  { %200 = vadd.xlane.f32.xlu0 %v199_v37 }
  0xcd   :  { %v185_v38 = vpop.xlane.xlu0 %184 }
  0xce   :  { %v186_v39 = vrot.slane %v185_v38, 4 }
  0xd0   :  { %v187_v40 = vadd.f32 %v186_v39, %v185_v38 }
  0xd2   :  { %v188_v41 = vrot.slane %v187_v40, 2 }
  0xd4   :  { %v189_v42 = vadd.f32 %v188_v41, %v187_v40 }
  0xd6   :  { %v190_v43 = vrot.slane %v189_v42, 1 }
  0xd8   :  { %v191_v44 = vadd.f32 %v190_v43, %v189_v42 }
  0xda   :  { %302 = vpush %v191_v44 }
  0xe1   :  { %v257_v45 = vpop.xlane.xlu1 %256 }
  0xe2   :  { %v258_v46 = vrot.slane %v257_v45, 4 }
  0xe4   :  { %v259_v47 = vadd.f32 %v258_v46, %v257_v45 }
  0xe6   :  { %v260_v48 = vrot.slane %v259_v47, 2 }
  0xe8   :  { %v261_v52 = vadd.f32 %v260_v48, %v259_v47 }
  0xea   :  { %v262_v55 = vrot.slane %v261_v52, 1 }
  0xec   :  { %v263_v58 = vadd.f32 %v262_v55, %v261_v52 }
  0xf1   :  { %v201_v49 = vpop.xlane.xlu0 %200 }
  0xf2   :  { %v202_v50 = vrot.slane %v201_v49, 4 }
  0xf4   :  { %v203_v51 = vadd.f32 %v202_v50, %v201_v49 }
  0xf6   :  { %v204_v53 = vrot.slane %v203_v51, 2 }
  0xf8   :  { %v205_v54 = vadd.f32 %v204_v53, %v203_v51 }
  0xfa   :  { %v206_v56 = vrot.slane %v205_v54, 1 }
  0xfc   :  { %v207_v57 = vadd.f32 %v206_v56, %v205_v54 }
  0xfe   :  { %304 = vpush %v207_v57 }
  0xff   :  { %306 = vpush %v263_v58 }
 0x10b   :  { %s303_s2 = spop %302 }
 0x10c   :  { %s266_s3 = smul.f32 0.0001, %s303_s2  ;;  %v274_v59 = vstv %s303_s2 }
 0x10d   :  { %v275_v61 = vsel %vm273_vm11, %v274_v59, 0.0 }
 0x10e   :  { %v280_v0 = vstv %s266_s3 }
 0x12f   :  { %s305_s7 = spop %304 }
 0x130   :  { %s209_s8 = smul.f32 0.5, %s305_s7  ;;  %s307_s9 = spop %306 }
 0x131   :  { %s265_s10 = smul.f32 0.1, %s307_s9 }
 0x132   :  { %s267_s11 = sadd.f32 %s266_s3, %s209_s8  ;;  %v278_v60 = vstv %s209_s8 }
 0x133   :  { %v276_v62 = vstv %s265_s10 }
 0x134   :  { %s268_s14 = sadd.f32 %s267_s11, %s265_s10  ;;  %v277_v63 = vsel %vm272_vm12, %v276_v62, %v275_v61 }
 0x135   :  { %v279_v1 = vsel %vm271_vm13, %v278_v60, %v277_v63 }
 0x136   :  { %v282_v2 = vstv %s268_s14  ;;  %v281_v3 = vsel %vm270_vm14, %v280_v0, %v279_v1 }
 0x137   :  { %v283_v5 = vsel %vm269_vm15, %v282_v2, %v281_v3 }
 0x138   :  { %284 = vst [vmem:[#allocation10] sm:$0xff] %v283_v5 }
 0x139   :  { %431 = shalt.err (!%p428_p10)
}
 0x13a   :  { %294 = dma.vmem_to_hbm [thread:$0]  %s292_s13, 128, %s521_s4, [#allocation4]  }
 0x13b   :  { %446 = dma.done.wait [#allocation4], 128  }
 0x13c   :  { %447 = vsyncadd [#allocation4], 4294967168 }
 0x13d   :  { %298 = vsyncpa [#allocation3], 1 }
 0x13e   :  { %299 = vsyncpa [#allocation6], 1 }
 0x13f   :  { %300 = vsyncpa [#allocation9], 1 }
 0x140   :  { %301 = vsyncpa [#allocation4], 1 }

</bundles_post_ra>
